<compile_context>
chip_gen: v7x
topology: tpu7x:2x2x1
jax: 0.10.0
libtpu: 0.0.40
codegen_flags: <defaults>
</compile_context>

<pallas_src>
import functools
import math

import jax
import jax.numpy as jnp
from jax.experimental import pallas as pl
from jax.experimental.pallas import tpu as pltpu


# ----------------------------------------------------------------------------
# Per-generation VMEM budgets and byte-targeted tile sizing
# ----------------------------------------------------------------------------
def _vmem_capacity_bytes():
    try:
        return int(pltpu.get_tpu_info().vmem_capacity_bytes)
    except Exception:
        pass
    try:
        kind = jax.devices()[0].device_kind.lower()
        if "v7" in kind or "7x" in kind:
            return 64 * 1024 * 1024
    except Exception:
        pass
    return 128 * 1024 * 1024


@functools.lru_cache(maxsize=None)
def _chip_budgets():
    cap = _vmem_capacity_bytes()
    if cap >= 96 * 1024 * 1024:            # v5e / v6e: 128 MiB physical VMEM
        return 64 * 1024 * 1024, 24 * 1024 * 1024   # (vmem_limit, block byte budget)
    return 40 * 1024 * 1024, 14 * 1024 * 1024       # v7x: 64 MiB per TensorCore


def _per_block_budget(itemsize):
    """Returns (vmem_limit_bytes, per-buffer block byte target)."""
    vmem_limit, block_budget = _chip_budgets()
    # 2x in + 2x out double-buffered blocks; extra headroom for the f32 upcast
    # temporaries when the input is narrower than f32.
    divisor = 4 if itemsize >= 4 else 6
    return vmem_limit, block_budget // divisor


def _pick_lane_tile(full, bytes_per_lane, per_block):
    """Lane-axis tile: multiple of 128 sized to ~per_block bytes, or the full axis."""
    max_lanes = int(per_block // max(bytes_per_lane, 1))
    max_lanes = max(128, (max_lanes // 128) * 128)
    return full if full <= max_lanes else max_lanes


def _pick_row_tile(rows, bytes_per_row, per_block):
    """Sublane-axis tile: multiple of 8 sized to ~per_block bytes, or the full axis."""
    max_rows = int(per_block // max(bytes_per_row, 1))
    max_rows = max(8, (max_rows // 8) * 8)
    return rows if rows <= max_rows else max_rows


# ----------------------------------------------------------------------------
# Shared fused scale/shift epilogue kernel: o = x * a + b   (works for 3D and 4D blocks)
# ----------------------------------------------------------------------------
def _affine_apply_kernel(x_ref, a_ref, b_ref, o_ref):
    x = x_ref[...].astype(jnp.float32)
    o_ref[...] = (x * a_ref[...] + b_ref[...]).astype(o_ref.dtype)


# ----------------------------------------------------------------------------
# RMSNorm  (norm_type == 'rms')
# x (N, C, *spatial) reduced over C.  sqrt(C) is folded into g in the wrapper.
# If S = prod(spatial) is a multiple of 128 we use a (1, C, rows, 128) block so the
# channel reduction is pure VPU work and every vreg is fully occupied.
# ----------------------------------------------------------------------------
def _rms_kernel_4d(x_ref, g_ref, o_ref, *, eps):
    x = x_ref[...].astype(jnp.float32)                       # (1, C, st, 128)
    ss = jnp.sum(x * x, axis=1, keepdims=True)               # (1, 1, st, 128)
    # F.normalize clamps the norm at eps; sqrt is monotone -> clamp ss at eps^2
    # and use a single EUP rsqrt instead of sqrt + divide.
    inv = jax.lax.rsqrt(jnp.maximum(ss, eps * eps))
    g = g_ref[...][None]                                     # (1, C, 1, 1), f32, sqrt(C) folded
    o_ref[...] = (x * inv * g).astype(o_ref.dtype)


def _rms_kernel_3d(x_ref, g_ref, o_ref, *, eps):
    x = x_ref[...].astype(jnp.float32)                       # (1, C, ts)
    ss = jnp.sum(x * x, axis=1, keepdims=True)               # (1, 1, ts)
    inv = jax.lax.rsqrt(jnp.maximum(ss, eps * eps))
    g = g_ref[...][None]                                     # (1, C, 1)
    o_ref[...] = (x * inv * g).astype(o_ref.dtype)


def rms_norm(x, g, *, eps=1e-12, lane_tile=None, row_tile=None):
    # x: (N, C, *spatial),  g: (1, C, 1, 1, 1)
    N, C = x.shape[0], x.shape[1]
    S = math.prod(x.shape[2:])
    itemsize = jnp.dtype(x.dtype).itemsize
    vmem_limit, per_block = _per_block_budget(itemsize)
    g_f32 = g.reshape(C).astype(jnp.float32) * (C ** 0.5)    # fold sqrt(C) once (C elems, free)

    if S % 128 == 0:
        # Lane-dense layout: every vreg fully occupied; channel reduce = VPU adds.
        rows = S // 128
        x4 = x.reshape(N, C, rows, 128)
        st = row_tile or _pick_row_tile(rows, C * 128 * itemsize, per_block)
        out = pl.pallas_call(
            functools.partial(_rms_kernel_4d, eps=eps),
            out_shape=jax.ShapeDtypeStruct((N, C, rows, 128), x.dtype),
            grid=(N, pl.cdiv(rows, st)),
            in_specs=[
                pl.BlockSpec((1, C, st, 128), lambda n, r: (n, 0, r, 0)),
                pl.BlockSpec((C, 1, 1), lambda n, r: (0, 0, 0)),
            ],
            out_specs=pl.BlockSpec((1, C, st, 128), lambda n, r: (n, 0, r, 0)),
            compiler_params=pltpu.CompilerParams(
                dimension_semantics=("parallel", "parallel"),
                vmem_limit_bytes=vmem_limit),
        )(x4, g_f32.reshape(C, 1, 1))
        return out.reshape(x.shape)

    # Generic layout: spatial on the lane axis, ragged last block (masked writes).
    x3 = x.reshape(N, C, S)
    ts = lane_tile or _pick_lane_tile(S, C * itemsize, per_block)
    out = pl.pallas_call(
        functools.partial(_rms_kernel_3d, eps=eps),
        out_shape=jax.ShapeDtypeStruct((N, C, S), x.dtype),
        grid=(N, pl.cdiv(S, ts)),
        in_specs=[
            pl.BlockSpec((1, C, ts), lambda n, s: (n, 0, s)),
            pl.BlockSpec((C, 1), lambda n, s: (0, 0)),
        ],
        out_specs=pl.BlockSpec((1, C, ts), lambda n, s: (n, 0, s)),
        compiler_params=pltpu.CompilerParams(
            dimension_semantics=("parallel", "parallel"),
            vmem_limit_bytes=vmem_limit),
    )(x3, g_f32.reshape(C, 1))
    return out.reshape(x.shape)


# ----------------------------------------------------------------------------
# GroupNorm  (norm_type == 'group')
# Fast path: one (1, 1, Cg, S) slab per (batch, group) grid step.
# Tiled path (large slabs / v7x VMEM): sum/sumsq accumulator over an 'arbitrary'
# S-tile axis (ragged tail masked in-kernel), a/b' fixup in the wrapper, then a
# fused scale/shift sweep.
# ----------------------------------------------------------------------------
def _gn_full_kernel(x_ref, w_ref, b_ref, o_ref, *, eps, inv_count):
    x = x_ref[...].astype(jnp.float32)                       # (1, 1, Cg, S)
    s = jnp.sum(x)
    sq = jnp.sum(x * x)
    # TODO(synk): single-pass var = E[x^2] - mean^2 can cancel for |mean| >> std;
    # use a shifted/two-pass variance if inputs are far from zero-centered.
    mean = s * inv_count
    var = jnp.maximum(sq * inv_count - mean * mean, 0.0)
    inv = jax.lax.rsqrt(var + eps)
    w = w_ref[...][None]                                     # (1, 1, Cg, 1) f32
    b = b_ref[...][None]
    a = w * inv
    bp = b - mean * a
    o_ref[...] = (x * a + bp).astype(o_ref.dtype)


def _gn_stats_kernel(x_ref, sum_ref, sq_ref, *, total, lane_tile):
    si = pl.program_id(2)

    @pl.when(si == 0)
    def _():
        sum_ref[...] = jnp.zeros_like(sum_ref)
        sq_ref[...] = jnp.zeros_like(sq_ref)

    x = x_ref[...].astype(jnp.float32)                       # (1, 1, Cg, ts)
    lane = si * lane_tile + jax.lax.broadcasted_iota(jnp.int32, x.shape, 3)
    x = jnp.where(lane < total, x, 0.0)                      # mask ragged tail
    sum_ref[...] += jnp.sum(x, axis=3, keepdims=True)        # (1, 1, Cg, 1)
    sq_ref[...] += jnp.sum(x * x, axis=3, keepdims=True)


def group_norm(x, weight, bias, num_groups, *, eps=1e-5, s_tile=None, force_tiled=False):
    N, C = x.shape[0], x.shape[1]
    S = math.prod(x.shape[2:])
    G = num_groups
    assert C % G == 0
    Cg = C // G
    itemsize = jnp.dtype(x.dtype).itemsize
    vmem_limit, per_block = _per_block_budget(itemsize)
    x4 = x.reshape(N, G, Cg, S)

    if not force_tiled and Cg * S * itemsize <= per_block:
        # Fast path: whole (Cg, S) slab per grid step, single-pass stats + fused epilogue.
        out = pl.pallas_call(
            functools.partial(_gn_full_kernel, eps=eps, inv_count=1.0 / float(Cg * S)),
            out_shape=jax.ShapeDtypeStruct((N, G, Cg, S), x.dtype),
            grid=(N, G),
            in_specs=[
                pl.BlockSpec((1, 1, Cg, S), lambda n, g: (n, g, 0, 0)),
                pl.BlockSpec((1, Cg, 1), lambda n, g: (g, 0, 0)),
                pl.BlockSpec((1, Cg, 1), lambda n, g: (g, 0, 0)),
            ],
            out_specs=pl.BlockSpec((1, 1, Cg, S), lambda n, g: (n, g, 0, 0)),
            compiler_params=pltpu.CompilerParams(
                dimension_semantics=("parallel", "parallel"),
                vmem_limit_bytes=vmem_limit),
        )(x4, weight.reshape(G, Cg, 1).astype(jnp.float32),
          bias.reshape(G, Cg, 1).astype(jnp.float32))
        return out.reshape(x.shape)

    # Tiled path for large slabs (keeps v7x's 64 MiB VMEM safe).
    ts = s_tile or _pick_lane_tile(S, Cg * itemsize, per_block)
    n_s = pl.cdiv(S, ts)

    # Pass 1: per-channel sum / sumsq accumulated across the 'arbitrary' S axis.
    s_part, sq_part = pl.pallas_call(
        functools.partial(_gn_stats_kernel, total=S, lane_tile=ts),
        out_shape=(jax.ShapeDtypeStruct((N, G, Cg, 1), jnp.float32),
                   jax.ShapeDtypeStruct((N, G, Cg, 1), jnp.float32)),
        grid=(N, G, n_s),
        in_specs=[pl.BlockSpec((1, 1, Cg, ts), lambda n, g, s: (n, g, 0, s))],
        out_specs=(pl.BlockSpec((1, 1, Cg, 1), lambda n, g, s: (n, g, 0, 0)),
                   pl.BlockSpec((1, 1, Cg, 1), lambda n, g, s: (n, g, 0, 0))),
        compiler_params=pltpu.CompilerParams(
            dimension_semantics=("parallel", "parallel", "arbitrary"),
            vmem_limit_bytes=vmem_limit),
    )(x4)

    # Wrapper-side fixup (O(N*C) math): per-(n,g) stats, per-channel fused scale/shift.
    count = float(Cg * S)
    s_ng = jnp.sum(s_part, axis=2, keepdims=True)            # (N, G, 1, 1)
    sq_ng = jnp.sum(sq_part, axis=2, keepdims=True)
    mean = s_ng / count
    var = jnp.maximum(sq_ng / count - mean * mean, 0.0)
    inv = jax.lax.rsqrt(var + eps)
    w = weight.reshape(1, G, Cg, 1).astype(jnp.float32)
    b = bias.reshape(1, G, Cg, 1).astype(jnp.float32)
    a = w * inv                                              # (N, G, Cg, 1)
    bp = b - mean * a

    # Pass 2: fused scale/shift, fully parallel grid.
    out = pl.pallas_call(
        _affine_apply_kernel,
        out_shape=jax.ShapeDtypeStruct((N, G, Cg, S), x.dtype),
        grid=(N, G, n_s),
        in_specs=[
            pl.BlockSpec((1, 1, Cg, ts), lambda n, g, s: (n, g, 0, s)),
            pl.BlockSpec((1, 1, Cg, 1), lambda n, g, s: (n, g, 0, 0)),
            pl.BlockSpec((1, 1, Cg, 1), lambda n, g, s: (n, g, 0, 0)),
        ],
        out_specs=pl.BlockSpec((1, 1, Cg, ts), lambda n, g, s: (n, g, 0, s)),
        compiler_params=pltpu.CompilerParams(
            dimension_semantics=("parallel", "parallel", "parallel"),
            vmem_limit_bytes=vmem_limit),
    )(x4, a, bp)
    return out.reshape(x.shape)


# ----------------------------------------------------------------------------
# BatchNorm1d  (norm_type == 'batch'), training-mode batch statistics
# Fast path: whole (N, C, L) tensor in one block -> stats + apply in one pallas_call
#            (one HBM read + one write instead of two reads + one write).
# Large path: stats pass with per-batch partial sums (N axis 'parallel' -> megacore
#             on v7x; ragged L tail masked in-kernel), tiny wrapper reduce over N,
#             then a fused, fully-parallel scale/shift pass.
# TODO(synk): running-stats (eval-mode) path not implemented; freshly-built module runs in train mode.
# ----------------------------------------------------------------------------
def _bn_fused_kernel(x_ref, w_ref, b_ref, o_ref, *, eps, inv_count):
    x = x_ref[...].astype(jnp.float32)                       # (N, C, L)
    s = jnp.sum(x, axis=(0, 2), keepdims=True)               # (1, C, 1)
    sq = jnp.sum(x * x, axis=(0, 2), keepdims=True)
    mean = s * inv_count
    var = jnp.maximum(sq * inv_count - mean * mean, 0.0)
    inv = jax.lax.rsqrt(var + eps)
    a = w_ref[...] * inv
    bp = b_ref[...] - mean * a
    o_ref[...] = (x * a + bp).astype(o_ref.dtype)


def _bn_stats_kernel(x_ref, sum_ref, sq_ref, *, total, lane_tile):
    li = pl.program_id(1)

    @pl.when(li == 0)
    def _():
        sum_ref[...] = jnp.zeros_like(sum_ref)
        sq_ref[...] = jnp.zeros_like(sq_ref)

    x = x_ref[...].astype(jnp.float32)                       # (1, C, Lt)
    lane = li * lane_tile + jax.lax.broadcasted_iota(jnp.int32, x.shape, 2)
    x = jnp.where(lane < total, x, 0.0)                      # mask ragged tail
    sum_ref[...] += jnp.sum(x, axis=2, keepdims=True)        # (1, C, 1)
    sq_ref[...] += jnp.sum(x * x, axis=2, keepdims=True)


def batch_norm1d(x, weight, bias, *, eps=1e-5, lane_tile=None, force_two_pass=False):
    squeeze = False
    if x.ndim == 2:                                          # BatchNorm1d also accepts (N, C)
        x = x[:, :, None]
        squeeze = True
    N, C, L = x.shape
    itemsize = jnp.dtype(x.dtype).itemsize
    vmem_limit, per_block = _per_block_budget(itemsize)
    w_f32 = weight.reshape(1, C, 1).astype(jnp.float32)
    b_f32 = bias.reshape(1, C, 1).astype(jnp.float32)

    if not force_two_pass and N * C * L * itemsize <= per_block:
        # Single-call fused path: one HBM read, one write.
        out = pl.pallas_call(
            functools.partial(_bn_fused_kernel, eps=eps, inv_count=1.0 / float(N * L)),
            out_shape=jax.ShapeDtypeStruct((N, C, L), x.dtype),
            grid=(1,),
            in_specs=[
                pl.BlockSpec((N, C, L), lambda i: (0, 0, 0)),
                pl.BlockSpec((1, C, 1), lambda i: (0, 0, 0)),
                pl.BlockSpec((1, C, 1), lambda i: (0, 0, 0)),
            ],
            out_specs=pl.BlockSpec((N, C, L), lambda i: (0, 0, 0)),
            compiler_params=pltpu.CompilerParams(
                dimension_semantics=("arbitrary",),
                vmem_limit_bytes=vmem_limit),
        )(x, w_f32, b_f32)
        return out[:, :, 0] if squeeze else out

    Lt = lane_tile or _pick_lane_tile(L, C * itemsize, per_block)
    n_l = pl.cdiv(L, Lt)

    # Pass 1: per-batch partial sum / sumsq (N parallel -> megacore-sharded on v7x).
    s_part, sq_part = pl.pallas_call(
        functools.partial(_bn_stats_kernel, total=L, lane_tile=Lt),
        out_shape=(jax.ShapeDtypeStruct((N, C, 1), jnp.float32),
                   jax.ShapeDtypeStruct((N, C, 1), jnp.float32)),
        grid=(N, n_l),
        in_specs=[pl.BlockSpec((1, C, Lt), lambda n, l: (n, 0, l))],
        out_specs=(pl.BlockSpec((1, C, 1), lambda n, l: (n, 0, 0)),
                   pl.BlockSpec((1, C, 1), lambda n, l: (n, 0, 0))),
        compiler_params=pltpu.CompilerParams(
            dimension_semantics=("parallel", "arbitrary"),
            vmem_limit_bytes=vmem_limit),
    )(x)

    # Wrapper-side reduce over N + per-channel a/b' fixup (C-element math).
    count = float(N * L)
    s = jnp.sum(s_part, axis=0, keepdims=True)               # (1, C, 1)
    sq = jnp.sum(sq_part, axis=0, keepdims=True)
    mean = s / count
    var = jnp.maximum(sq / count - mean * mean, 0.0)          # biased var, clamped >= 0
    a = w_f32 * jax.lax.rsqrt(var + eps)
    bp = b_f32 - mean * a

    # Pass 2: fused scale/shift, lane-dense blocks, fully parallel grid.
    out = pl.pallas_call(
        _affine_apply_kernel,
        out_shape=jax.ShapeDtypeStruct((N, C, L), x.dtype),
        grid=(N, n_l),
        in_specs=[
            pl.BlockSpec((1, C, Lt), lambda n, l: (n, 0, l)),
            pl.BlockSpec((1, C, 1), lambda n, l: (0, 0, 0)),
            pl.BlockSpec((1, C, 1), lambda n, l: (0, 0, 0)),
        ],
        out_specs=pl.BlockSpec((1, C, Lt), lambda n, l: (n, 0, l)),
        compiler_params=pltpu.CompilerParams(
            dimension_semantics=("parallel", "parallel"),
            vmem_limit_bytes=vmem_limit),
    )(x, a, bp)
    return out[:, :, 0] if squeeze else out


# ----------------------------------------------------------------------------
# Norms forward (mirrors Norms.forward)
# ----------------------------------------------------------------------------
def norms_forward(x, params, norm_type, num_groups=32):
    if norm_type == 'batch':
        return batch_norm1d(x, params['weight'], params['bias'])
    elif norm_type == 'group':
        return group_norm(x, params['weight'], params['bias'], num_groups)
    elif norm_type == 'rms':
        return rms_norm(x, params['g'])
    else:
        return x  # nn.Identity


# ----------------------------------------------------------------------------
# Pure-JAX references for verification
# ----------------------------------------------------------------------------
def _rms_ref(x, g, eps=1e-12):
    xf = x.astype(jnp.float32)
    norm = jnp.sqrt(jnp.sum(xf * xf, axis=1, keepdims=True))
    c = x.shape[1]
    return (xf / jnp.maximum(norm, eps) * g.astype(jnp.float32) * (c ** 0.5)).astype(x.dtype)


def _group_ref(x, w, b, G, eps=1e-5):
    N, C = x.shape[:2]
    xg = x.reshape(N, G, -1).astype(jnp.float32)
    mean = xg.mean(-1, keepdims=True)
    var = jnp.square(xg - mean).mean(-1, keepdims=True)
    xn = ((xg - mean) * jax.lax.rsqrt(var + eps)).reshape(x.shape)
    bshape = (1, C) + (1,) * (x.ndim - 2)
    return (xn * w.reshape(bshape) + b.reshape(bshape)).astype(x.dtype)


def _batch_ref(x, w, b, eps=1e-5):
    xf = x.astype(jnp.float32)
    mean = xf.mean(axis=(0, 2), keepdims=True)
    var = jnp.square(xf - mean).mean(axis=(0, 2), keepdims=True)
    xn = (xf - mean) * jax.lax.rsqrt(var + eps)
    return (xn * w.reshape(1, -1, 1) + b.reshape(1, -1, 1)).astype(x.dtype)


if __name__ == "__main__":
    key = jax.random.PRNGKey(0)
    ks = jax.random.split(key, 10)
    tol = dict(atol=1e-4, rtol=1e-4)

    # ---- rms: 5D NCDHW, S = 256 -> lane-128 fast layout ----
    C_rms = 4
    x_rms = jax.random.normal(ks[0], (2, C_rms, 4, 8, 8), dtype=jnp.float32)
    g = jnp.ones((1, C_rms, 1, 1, 1), dtype=jnp.float32)        # torch.ones init
    out = jax.block_until_ready(norms_forward(x_rms, {'g': g}, 'rms'))
    assert jnp.allclose(out, _rms_ref(x_rms, g), **tol)

    # ---- rms: S = 200 (not a multiple of 128) -> generic layout with a ragged tail ----
    x_rms2 = jax.random.normal(ks[1], (2, C_rms, 5, 5, 8), dtype=jnp.float32)
    out = jax.block_until_ready(rms_norm(x_rms2, g, lane_tile=128))
    assert jnp.allclose(out, _rms_ref(x_rms2, g), **tol)

    # ---- group: 4D NCHW, fast (single-slab) path ----
    C_grp, G = 32, 4
    x_grp = jax.random.normal(ks[2], (2, C_grp, 8, 8), dtype=jnp.float32)
    w_grp = jnp.ones((C_grp,), jnp.float32)                     # GroupNorm affine init
    b_grp = jnp.zeros((C_grp,), jnp.float32)
    out = jax.block_until_ready(
        norms_forward(x_grp, {'weight': w_grp, 'bias': b_grp}, 'group', num_groups=G))
    assert jnp.allclose(out, _group_ref(x_grp, w_grp, b_grp, G), **tol)

    # ---- group: tiled (stats + apply) path with a ragged S tail (S = 320, tile 128) ----
    C_g2, G2 = 8, 2
    x_grp2 = jax.random.normal(ks[3], (1, C_g2, 5, 64), dtype=jnp.float32)
    w_g2 = jax.random.normal(ks[4], (C_g2,), dtype=jnp.float32)
    b_g2 = jax.random.normal(ks[5], (C_g2,), dtype=jnp.float32)
    out = jax.block_until_ready(group_norm(x_grp2, w_g2, b_g2, G2, force_tiled=True, s_tile=128))
    assert jnp.allclose(out, _group_ref(x_grp2, w_g2, b_g2, G2), **tol)

    # ---- batch: 3D NCL, single-call fused path ----
    C_bn = 4
    x_bn = jax.random.normal(ks[6], (2, C_bn, 8), dtype=jnp.float32)
    w_bn = jnp.ones((C_bn,), jnp.float32)                       # BatchNorm affine init
    b_bn = jnp.zeros((C_bn,), jnp.float32)
    out = jax.block_until_ready(norms_forward(x_bn, {'weight': w_bn, 'bias': b_bn}, 'batch'))
    assert jnp.allclose(out, _batch_ref(x_bn, w_bn, b_bn), **tol)

    # ---- batch: two-pass path with a ragged L tail (L = 200, tile 128) ----
    x_bn2 = jax.random.normal(ks[7], (2, C_bn, 200), dtype=jnp.float32)
    out = jax.block_until_ready(
        batch_norm1d(x_bn2, w_bn, b_bn, force_two_pass=True, lane_tile=128))
    assert jnp.allclose(out, _batch_ref(x_bn2, w_bn, b_bn), **tol)

    # ---- identity ----
    out_id = jax.block_until_ready(norms_forward(x_bn, {}, 'none'))
    assert jnp.array_equal(out_id, x_bn)

    print("KERNEL_OK")
</pallas_src>

<mosaic_0001>
module attributes {stable_mosaic.version = 11 : i64} {
  func.func @_rms_kernel_4d(%arg0: i32, %arg1: i32, %arg2: memref<1x4x2x128xf32, #tpu.memory_space<vmem>>, %arg3: memref<4x1x1xf32, #tpu.memory_space<vmem>>, %arg4: memref<1x4x2x128xf32, #tpu.memory_space<vmem>>) attributes {dimension_semantics = [#tpu.dimension_semantics<parallel>, #tpu.dimension_semantics<parallel>], iteration_bounds = array<i64: 2, 1>, scalar_prefetch = 0 : i64, scratch_operands = 0 : i64, tpu.core_type = #tpu.core_type<tc>, window_params = [{transform_indices = @transform_0, window_bounds = array<i64: 1, 4, 2, 128>}, {pipeline_mode = #tpu.pipeline_mode<synchronous>, transform_indices = @transform_1, window_bounds = array<i64: 4, 1, 1>}, {transform_indices = @transform_2, window_bounds = array<i64: 1, 4, 2, 128>}]} {
    %c0 = arith.constant 0 : index
    %c0_0 = arith.constant 0 : index
    %c0_1 = arith.constant 0 : index
    %c0_2 = arith.constant 0 : index
    %0 = vector.load %arg2[%c0, %c0_0, %c0_1, %c0_2] : memref<1x4x2x128xf32, #tpu.memory_space<vmem>>, vector<1x4x2x128xf32>
    %1 = arith.mulf %0, %0 : vector<1x4x2x128xf32>
    %cst = arith.constant dense<0.000000e+00> : vector<1x2x128xf32>
    %2 = vector.multi_reduction <add>, %1, %cst [1] : vector<1x4x2x128xf32> to vector<1x2x128xf32>
    %3 = vector.shape_cast %2 : vector<1x2x128xf32> to vector<1x1x2x128xf32>
    %cst_3 = arith.constant 1.000000e-24 : f32
    %4 = vector.broadcast %cst_3 : f32 to vector<1x1x2x128xf32>
    %5 = arith.maximumf %3, %4 : vector<1x1x2x128xf32>
    %6 = math.rsqrt %5 : vector<1x1x2x128xf32>
    %c0_4 = arith.constant 0 : index
    %c0_5 = arith.constant 0 : index
    %c0_6 = arith.constant 0 : index
    %7 = vector.load %arg3[%c0_4, %c0_5, %c0_6] : memref<4x1x1xf32, #tpu.memory_space<vmem>>, vector<4x1x1xf32>
    %8 = vector.shape_cast %7 : vector<4x1x1xf32> to vector<1x4x1x1xf32>
    %9 = vector.broadcast %6 : vector<1x1x2x128xf32> to vector<1x4x2x128xf32>
    %10 = arith.mulf %0, %9 : vector<1x4x2x128xf32>
    %11 = vector.broadcast %8 : vector<1x4x1x1xf32> to vector<1x4x2x128xf32>
    %12 = arith.mulf %10, %11 : vector<1x4x2x128xf32>
    %c0_7 = arith.constant 0 : index
    %c0_8 = arith.constant 0 : index
    %c0_9 = arith.constant 0 : index
    %c0_10 = arith.constant 0 : index
    %13 = vector.load %arg4[%c0_7, %c0_8, %c0_9, %c0_10] : memref<1x4x2x128xf32, #tpu.memory_space<vmem>>, vector<1x4x2x128xf32>
    tpu.vector_store %arg4[%c0_7, %c0_8, %c0_9, %c0_10], %12 {strides = array<i32>} : memref<1x4x2x128xf32, #tpu.memory_space<vmem>>, vector<1x4x2x128xf32>,
    return
  }
  func.func @transform_0(%arg0: i32, %arg1: i32) -> (i32, i32, i32, i32) {
    %c0_i32 = arith.constant 0 : i32
    %c0_i32_0 = arith.constant 0 : i32
    %c0_i32_1 = arith.constant 0 : i32
    return %arg0, %c0_i32, %arg1, %c0_i32_0 : i32, i32, i32, i32
  }
  func.func @transform_1(%arg0: i32, %arg1: i32) -> (i32, i32, i32) {
    %c0_i32 = arith.constant 0 : i32
    %c0_i32_0 = arith.constant 0 : i32
    %c0_i32_1 = arith.constant 0 : i32
    %c0_i32_2 = arith.constant 0 : i32
    return %c0_i32, %c0_i32_0, %c0_i32_1 : i32, i32, i32
  }
  func.func @transform_2(%arg0: i32, %arg1: i32) -> (i32, i32, i32, i32) {
    %c0_i32 = arith.constant 0 : i32
    %c0_i32_0 = arith.constant 0 : i32
    %c0_i32_1 = arith.constant 0 : i32
    return %arg0, %c0_i32, %arg1, %c0_i32_0 : i32, i32, i32, i32
  }
}

</mosaic_0001>

<bundles_post_ra>
// kernel: tpu_custom_call.1
= control target key start
LH: loop header
LB: loop body
LE: loop exit
PB: predicated region body
PF: predicated region fallthrough
CT: control target
= control target key end

     0   :  { %7 = vsyncpa [#allocation3], 0  ;;  %s875_s0 = inlined_call_operand.hbm [shape: f32[2,4,2,128], index: 0, kind: input, shape index: {}]   ;;  %s876_s1 = inlined_call_operand.hbm [shape: f32[4,1,1], index: 1, kind: input, shape index: {}]   ;;  %s877_s2 = inlined_call_operand.hbm [shape: f32[2,4,2,128], index: 2, kind: output, shape index: {}]  }
   0x1   :  { %9 = vsyncpa [#allocation3 + $0x1], 0 }
   0x2   :  { %10 = vsyncpa [#allocation6], 0 }
   0x3   :  { %11 = vsyncpa [#allocation4], 0 }
   0x4   :  { %13 = vsyncpa [#allocation4 + $0x1], 0  ;;  %s652_s9 = smov 0   ;;  %s654_s10 = smov 0  }
   0x5   :  { %s656_s11 = smov 0   ;;  %s658_s12 = smov 0  }
   0x6   :  { %s660_s13 = smov 0   ;;  %s662_s14 = smov 0  }
   0x7 LB: > { %s374_s15 = sadd.s32 4294967295, %s625_s14   ;;  %s375_s16 = sadd.s32 4294967294, %s625_s14   ;;  %s625_s14 = sphi %s662_s14, %s19_s14   ;;  %s621_s13 = sphi %s660_s13, %s901_s13   ;;  %s617_s12 = sphi %s658_s12, %s900_s12   ;;  %s613_s11 = sphi %s656_s11, %s899_s11   ;;  %s609_s10 = sphi %s654_s10, %s898_s10   ;;  %s605_s9 = sphi %s652_s9, %s897_s9  }
   0x8   : > { %p53_p0 = scmp.ne.s32.totalorder %s609_s10, %s605_s9  ;;  %p686_p1 = scmp.eq.s32.totalorder %s374_s15, 0 }
   0x9   : > { %p690_p2 = scmp.eq.s32.totalorder %s374_s15, 1  ;;  %p106_p3 = scmp.eq.s32.totalorder %s375_s16, 1 }
   0xa   : > { %s882_s17 = scalar_select %p686_p1, 1, 0 }
   0xb   : > { %s883_s18 = scalar_select %p690_p2, 1, 0 }
   0xc   : > { %p696_p4 = por %p686_p1, %p53_p0  ;;  %p376_p5 = scmp.ge.s32.totalorder %s625_s14, 1 }
   0xd   : > { %p701_p6 = por %p106_p3, %p53_p0  ;;  %p113_p7 = scmp.lt.s32.totalorder %s625_s14, 3 }
   0xe   : > { %s884_s19 = scalar_select %p696_p4, 1, 0 }
   0xf   : > { %s885_s20 = scalar_select %p701_p6, 1, 0 }
  0x10   : > { %p706_p8 = pnand %p376_p5, %p113_p7  ;;  %s627_s22 = smov [#allocation5]  }
  0x11   : > { %s125_s23 = sshll.u32 %s627_s22, 4  ;;  %s31_s25 = sadd.s32 1, %s621_s13  ;;  %s126_s23 = int_to_ptr.vmem [resolvable:$true] %s125_s23 }
  0x12   : > { %s886_s21 = scalar_select %p706_p8, 1, 0 }
  0x13   : > { %p405_p9 = pneg %p706_p8  ;;  %s481_s28 = scalar_lea.hbm %s876_s1, 64 }
  0x14   : > { %p482_p12 = scmp.ne.s32.totalorder %s876_s1, %s481_s28  ;;  %p488_p5 = scmp.lt.u32.totalorder %s481_s28, %s876_s1 }
  0x15   : > { %p715_p11 = pnand %p405_p9, %p686_p1 }
  0x17   : > { %p483_p13 = pneg %p715_p11 }
  0x19   : > { %p484_p0 = pnand %p483_p13, %p482_p12 }
  0x1b   : > { %p485_p3 = pneg %p484_p0 }
  0x1d   : > { %p490_p7 = pnand %p488_p5, %p485_p3 }
  0x1f   : > { %493 = shalt.err (!%p490_p7)
}
  0x20   : > { %s494_s5 = scalar_lea.vmem %s126_s23, 64  ;;  %p502_p1 = scmp.lt.s32.totalorder %s126_s23, %s126_s23 }
  0x21   : > { %p495_p9 = scmp.ne.s32.totalorder %s126_s23, %s494_s5  ;;  %p503_p4 = scmp.lt.s32.totalorder %s494_s5, %s494_s5 }
  0x23   : > { %p497_p10 = pnand %p495_p9, %p483_p13  ;;  %p504_p8 = por %p503_p4, %p502_p1 }
  0x25   : > { %p498_p6 = pneg %p497_p10 }
  0x27   : > { %p505_p2 = pnand %p504_p8, %p498_p6 }
  0x29   : > { %508 = shalt.err (!%p505_p2)
}
  0x2a   : > { %s628_s6 = smov 16   ;;  %s629_s7 = smov 1  }
  0x2b   : > { %408 = dma.hbm_to_vmem [thread:$0]  (!%p715_p11), %s876_s1, 64, %s126_s23, [#allocation6], %s628_s6, %s628_s6, %s629_s7  }
  0x2c   : > { %p33_p1 = scmp.ge.s32.totalorder %s31_s25, 2  ;;  %s40_s16 = sadd.s32 1, %s613_s11 }
  0x2d   : > { %p47_p2 = scmp.ne.s32.totalorder %s613_s11, %s609_s10  ;;  %p48_p4 = scmp.eq.s32.totalorder %s625_s14, 0 }
  0x2e   : > { %s903_s25 = smov (%p33_p1, %s31_s25), 0  ;;  %p889_p8 = scmp.ne.s32.totalorder %s883_s18, 0 }
  0x2f   : > { %p742_p6 = por %p48_p4, %p47_p2  ;;  %s35_s24 = ssub.s32 %s621_s13, %s903_s25 }
  0x30   : > { %p748_p10 = por %p889_p8, %p47_p2  ;;  %p418_p12 = scmp.lt.s32.totalorder %s625_s14, 2 }
  0x31   : > { %p38_p11 = scmp.eq.s32.totalorder %s35_s24, 0  ;;  %s139_s23 = sand.u32 1, %s613_s11  }
  0x32   : > { %s379_s27 = sshll.u32 %s139_s23, 3  ;;  %s395_s29 = sshll.u32 %s621_s13, 7 }
  0x33   : > { %s757_s28 = scalar_select %p38_p11, %s613_s11, %s40_s16  }
  0x34   : > { %s763_s4 = scalar_lea.hbm %s875_s0, %s395_s29  ;;  %s143_s18 = scalar_lea.vmem [#allocation2], %s379_s27 }
  0x35   : > { %s151_s5 = sshll.u32 %s143_s18, 4  ;;  %p769_p13 = pnand %p418_p12, %p742_p6  ;;  %s765_s5 = int_to_ptr.vmem [resolvable:$true] %s151_s5 }
  0x36   : > { %s773_s7 = scalar_lea.sflag [#allocation3], %s139_s23  ;;  %s509_s8 = scalar_lea.hbm %s763_s4, 128 }
  0x37   : > { %p510_p0 = scmp.ne.s32.totalorder %s763_s4, %s509_s8  ;;  %p511_p3 = pneg %p769_p13 }
  0x38   : > { %s514_s22 = scalar_lea.hbm %s875_s0, 256  ;;  %p515_p9 = scmp.lt.u32.totalorder %s763_s4, %s875_s0 }
  0x39   : > { %p512_p5 = pnand %p511_p3, %p510_p0  ;;  %p516_p1 = scmp.lt.u32.totalorder %s514_s22, %s509_s8 }
  0x3a   : > { %p518_p4 = scmp.lt.u32.totalorder %s509_s8, %s763_s4 }
  0x3b   : > { %p513_p7 = pneg %p512_p5  ;;  %p517_p2 = por %p516_p1, %p515_p9 }
  0x3d   : > { %p519_p6 = por %p518_p4, %p517_p2 }
  0x3f   : > { %p520_p8 = pnand %p519_p6, %p513_p7 }
  0x41   : > { %523 = shalt.err (!%p520_p8)
}
  0x42   : > { %s524_s23 = scalar_lea.vmem %s765_s5, 128  ;;  %s630_s29 = smov [#allocation2]  }
  0x43   : > { %p525_p12 = scmp.ne.s32.totalorder %s765_s5, %s524_s23  ;;  %s529_s30 = sshll.u32 %s630_s29, 4  ;;  %s530_s30 = int_to_ptr.vmem [resolvable:$false] %s529_s30 }
  0x44   : > { %s531_s3 = scalar_lea.vmem %s530_s30, 256  ;;  %p532_p5 = scmp.lt.s32.totalorder %s765_s5, %s530_s30 }
  0x45   : > { %p527_p11 = pnand %p525_p12, %p511_p3  ;;  %p533_p9 = scmp.lt.s32.totalorder %s531_s3, %s524_s23 }
  0x47   : > { %p528_p0 = pneg %p527_p11  ;;  %p534_p1 = por %p533_p9, %p532_p5 }
  0x49   : > { %p535_p2 = pnand %p534_p1, %p528_p0 }
  0x4b   : > { %538 = shalt.err (!%p535_p2)
}
  0x4c   : > { %s631_s18 = smov 32   ;;  %s632_s8 = smov 2  }
  0x4d   : > { %412 = dma.hbm_to_vmem [thread:$0]  (!%p769_p13), %s763_s4, 128, %s765_s5, %s773_s7, %s631_s18, %s631_s18, %s632_s8  }
  0x4e   : > { %p892_p3 = scmp.ne.s32.totalorder %s886_s21, 0 }
  0x4f   : > { %s804_s15 = sand.u32 (!%p892_p3), 1, %s609_s10   ;;  %p893_p7 = scmp.ne.s32.totalorder (!%p892_p3), %s884_s19, 0 }
  0x50   : > { %163 = sbr.rel (%p892_p3) target bundleno = 242 (0xf2), region = 28  ;;  %s383_s16 = sshll.u32 (!%p892_p3), %s804_s15, 3 }
  0x51   : > { %s166_s22 = scalar_lea.sflag (!%p892_p3), [#allocation3], %s804_s15  ;;  %s169_s24 = scalar_lea.vmem (!%p892_p3), [#allocation2], %s383_s16 }
  0x57   : > { %592 = dma.done.wait (%p893_p7), %s166_s22, 128  }
  0x58   : > { %594 = vsyncadd (%p893_p7), %s166_s22, 4294967168  ;;  %p894_p13 = scmp.ne.s32.totalorder %s882_s17, 0 }
  0x5a   : > { %596 = dma.done.wait (%p894_p13), [#allocation6], 64  }
  0x5b   : > { %598 = vsyncadd (%p894_p13), [#allocation6], 4294967232  ;;  %v633_v0 = vmov 0   ;;  %v388_v1 = vld [vmem:[#allocation5 + $0x2] ss:$0 sm:$0xff]  ;;  %vm202_vm0 = vcmask 1041408  }
  0x5c   : > { %478 = vset.pattern.permute.xlu1 %v633_v0  ;;  %477 = vset.pattern.permute.xlu0 %v633_v0  ;;  %v386_v2 = vld [vmem:[#allocation5] ss:$0 sm:$0xff]  ;;  %v389_v3 = vld [vmem:[#allocation5 + $0x3] ss:$0 sm:$0xff]  ;;  %v387_v4 = vld [vmem:[#allocation5 + $0x1] ss:$0 sm:$0xff] }
  0x5d   : > { %249 = vperm.xlu1 %478, %v388_v1   ;;  %241 = vperm.xlu0 %477, %v386_v2   ;;  %v194_v5 = vld [vmem:[%s169_s24] sm:$0x3]  ;;  %v195_v6 = vld [vmem:[%s169_s24 + $0x2] sm:$0x3]  ;;  %v196_v9 = vld [vmem:[%s169_s24 + $0x4] sm:$0x3] }
  0x5e   : > { %v198_v7 = vmul.f32 %v194_v5, %v194_v5  ;;  %v199_v8 = vmul.f32 %v195_v6, %v195_v6  ;;  %v200_v10 = vmul.f32 %v196_v9, %v196_v9  ;;  %v197_v13 = vld [vmem:[%s169_s24 + $0x6] sm:$0x3]  ;;  %s193_s17 = scalar_lea.vmem [#allocation7], %s383_s16  ;;  %s396_s21 = sshll.u32 %s617_s12, 7 }
  0x5f   : > { %v201_v15 = vmul.f32 %v197_v13, %v197_v13  ;;  %s279_s19 = sshll.u32 %s193_s17, 4  ;;  %s826_s6 = scalar_lea.hbm %s877_s2, %s396_s21  ;;  %s821_s19 = int_to_ptr.vmem [resolvable:$true] %s279_s19 }
  0x60   : > { %v203_v11 = vsel %vm202_vm0, %v198_v7, 0.0  ;;  %v204_v12 = vsel %vm202_vm0, %v199_v8, 0.0  ;;  %v206_v16 = vsel %vm202_vm0, %v200_v10, 0.0  ;;  %s265_s7 = scalar_lea.sflag [#allocation4], %s804_s15  ;;  %s539_s12 = scalar_lea.vmem %s821_s19, 128 }
  0x61   : > { %253 = vperm.xlu1 %478, %v389_v3   ;;  %245 = vperm.xlu0 %477, %v387_v4   ;;  %v205_v14 = vadd.f32 %v204_v12, %v203_v11  ;;  %v208_v18 = vsel %vm202_vm0, %v201_v15, 0.0  ;;  %p540_p4 = scmp.ne.s32.totalorder %s821_s19, %s539_s12  ;;  %s634_s27 = smov [#allocation7]  }
  0x62   : > { %s543_s23 = sshll.u32 %s634_s27, 4  ;;  %s544_s23 = int_to_ptr.vmem [resolvable:$false] %s543_s23 }
  0x63   : > { %v207_v17 = vadd.f32 %v206_v16, %v205_v14  ;;  %p541_p6 = pnand %p540_p4, %p748_p10  ;;  %s545_s29 = scalar_lea.vmem %s544_s23, 256 }
  0x64   : > { %p546_p12 = scmp.lt.s32.totalorder %s821_s19, %s544_s23  ;;  %p547_p11 = scmp.lt.s32.totalorder %s545_s29, %s539_s12 }
  0x65   : > { %v209_v19 = vadd.f32 %v208_v18, %v207_v17  ;;  %p542_p8 = pneg %p541_p6 }
  0x66   : > { %p548_p0 = por %p547_p11, %p546_p12 }
  0x67   : > { %v210_v20 = vmax.f32 %v209_v19, 1e-24 }
  0x68   : > { %p549_p5 = pnand %p548_p0, %p542_p8 }
  0x69   : > { %479 = vrsqrt.f32 %v210_v20 }
  0x73   : > { %v480_v21 = vpop.eup %479 }
  0x74   : > { %v218_v22 = vmul.f32 %v480_v21, %v196_v9  ;;  %v216_v23 = vmul.f32 %v480_v21, %v194_v5  ;;  %v219_v28 = vmul.f32 %v480_v21, %v197_v13  ;;  %v217_v29 = vmul.f32 %v480_v21, %v195_v6 }
  0xdc   : > { %v250_v24 = vpop.permute.xlu1 %249  ;;  %v242_v25 = vpop.permute.xlu0 %241 }
  0xdd   : > { %v258_v26 = vmul.f32 %v250_v24, %v218_v22  ;;  %v256_v27 = vmul.f32 %v242_v25, %v216_v23 }
  0xdf   : > { %262 = vst [vmem:[%s193_s17 + $0x4] sm:$0x3] %v258_v26  ;;  %260 = vst [vmem:[%s193_s17] sm:$0x3] %v256_v27 }
  0xe0   : > { %v254_v30 = vpop.permute.xlu1 %253  ;;  %v246_v31 = vpop.permute.xlu0 %245 }
  0xe1   : > { %v259_v32 = vmul.f32 %v254_v30, %v219_v28  ;;  %v257_v33 = vmul.f32 %v246_v31, %v217_v29 }
  0xe3   : > { %263 = vst [vmem:[%s193_s17 + $0x6] sm:$0x3] %v259_v32  ;;  %261 = vst [vmem:[%s193_s17 + $0x2] sm:$0x3] %v257_v33 }
  0xe4   : > { %552 = shalt.err (!%p549_p5)
}
  0xe5   : > { %s553_s30 = scalar_lea.hbm %s826_s6, 128  ;;  %s557_s8 = scalar_lea.hbm %s877_s2, 256 }
  0xe6   : > { %p554_p9 = scmp.ne.s32.totalorder %s826_s6, %s553_s30  ;;  %p558_p3 = scmp.lt.u32.totalorder %s826_s6, %s877_s2 }
  0xe7   : > { %p559_p7 = scmp.lt.u32.totalorder %s557_s8, %s553_s30  ;;  %p561_p4 = scmp.lt.u32.totalorder %s553_s30, %s826_s6 }
  0xe8   : > { %p555_p1 = pnand %p554_p9, %p748_p10 }
  0xe9   : > { %p560_p13 = por %p559_p7, %p558_p3 }
  0xea   : > { %p556_p2 = pneg %p555_p1 }
  0xeb   : > { %p562_p6 = por %p561_p4, %p560_p13 }
  0xed   : > { %p563_p8 = pnand %p562_p6, %p556_p2 }
  0xef   : > { %566 = shalt.err (!%p563_p8)
}
  0xf0   : > { %s635_s24 = smov 32   ;;  %s636_s17 = smov 2  }
  0xf1   : > { %403 = dma.vmem_to_hbm [thread:$0]  (%p748_p10), %s821_s19, 128, %s826_s6, %s265_s7, %s635_s24, %s635_s24, %s636_s17  }
  0xf2 PF: > { %s294_s21 = sand.u32 1, %s605_s9   ;;  %p895_p12 = scmp.ne.s32.totalorder %s885_s20, 0 }
  0xf3   : > { %p896_p11 = scmp.ge.s32.totalorder %s625_s14, 2  ;;  %s295_s4 = scalar_lea.sflag [#allocation4], %s294_s21 }
  0xf5   : > { %p414_p0 = pnand %p896_p11, %p895_p12 }
  0xf7   : > { %600 = dma.done.wait (!%p414_p0), %s295_s4, 128  }
  0xf8   : > { %602 = vsyncadd (!%p414_p0), %s295_s4, 4294967168  ;;  %s19_s14 = sadd.s32 1, %s625_s14   ;;  %s897_s9 = smov %s609_s10 }
  0xf9   : > { %p16_p5 = scmp.ge.s32.totalorder %s19_s14, 4   ;;  %s898_s10 = smov %s613_s11 }
  0xfa   : > { %s899_s11 = smov %s757_s28  ;;  %s900_s12 = smov %s621_s13 }
  0xfb   : > { %s901_s13 = smov %s903_s25  ;;  %18 = sbr.rel (!%p16_p5) target bundleno = 7 (0x7), region = 77 }
 0x102   :  { %300 = vsyncpa [#allocation3], 1 }
 0x103   :  { %302 = vsyncpa [#allocation3 + $0x1], 1 }
 0x104   :  { %303 = vsyncpa [#allocation6], 1 }
 0x105   :  { %304 = vsyncpa [#allocation4], 1 }
 0x106   :  { %306 = vsyncpa [#allocation4 + $0x1], 1 }

</bundles_post_ra>
